<compile_context>
chip_gen: v7x
topology: tpu7x:2x2x1
jax: 0.10.0
libtpu: 0.0.40
codegen_flags: <defaults>
</compile_context>

<pallas_src>
import functools

import jax
import jax.numpy as jnp
from jax import lax
from jax.experimental import pallas as pl
from jax.experimental.pallas import tpu as pltpu

_EPS = 1e-8            # matches PyTorch cosine-similarity eps clamp
_EPS2 = _EPS * _EPS


def _round_up(x: int, m: int) -> int:
    return (x + m - 1) // m * m


def _cosine_loss_kernel(x_ref, y_ref, out_ref, *, true_b: int, tile_b: int):
    i = pl.program_id(0)

    x = x_ref[...].astype(jnp.float32)              # (tile_b, D)
    y = y_ref[...].astype(jnp.float32)

    # Row-wise dot products / squared norms (lane-axis reduction -> XLU).
    dot = jnp.sum(x * y, axis=-1, keepdims=True)    # (tile_b, 1)
    sxx = jnp.sum(x * x, axis=-1, keepdims=True)
    syy = jnp.sum(y * y, axis=-1, keepdims=True)

    # cos = dot / (max(||x||, eps) * max(||y||, eps))
    #     = dot * rsqrt(max(sxx, eps^2) * max(syy, eps^2))   (rsqrt -> EUP slot)
    cos = dot * lax.rsqrt(jnp.maximum(sxx, _EPS2) * jnp.maximum(syy, _EPS2))

    # Mask out padded tail rows (global row index >= true batch size).
    row = lax.broadcasted_iota(jnp.int32, cos.shape, 0) + i * tile_b
    contrib = jnp.where(row < true_b, 1.0 - cos, 0.0)
    partial = jnp.sum(contrib)                      # f32 scalar partial sum

    # Lane-dense (8, 128) output tile: partial sum at [0, 0], zeros elsewhere.
    r = lax.broadcasted_iota(jnp.int32, (8, 128), 0)
    c = lax.broadcasted_iota(jnp.int32, (8, 128), 1)
    out_ref[0] = jnp.where((r == 0) & (c == 0), partial, jnp.float32(0.0))


def cosine_loss(image_features: jax.Array, combined_features: jax.Array,
                margin: float = 0.1) -> jax.Array:
    """Pallas TPU implementation of CosineLoss.forward (target = all ones)."""
    assert image_features.shape == combined_features.shape
    assert image_features.ndim == 2
    del margin  # only relevant for target == -1 samples; none exist here.

    B, D = image_features.shape
    itemsize = jnp.dtype(image_features.dtype).itemsize

    # Tile budget: 2 inputs x 2 pipeline buffers x tile_b x D x itemsize <= ~24 MiB.
    budget_bytes = 24 * 1024 * 1024
    max_rows = max(8, (budget_bytes // (4 * D * itemsize)) // 8 * 8)
    tile_b = min(2048, max_rows, _round_up(B, 8))   # multiple of 8 by construction

    b_pad = _round_up(B, tile_b)
    num_tiles = b_pad // tile_b
    if b_pad != B:
        pad = ((0, b_pad - B), (0, 0))
        image_features = jnp.pad(image_features, pad)
        combined_features = jnp.pad(combined_features, pad)

    kernel = functools.partial(_cosine_loss_kernel, true_b=B, tile_b=tile_b)

    partials = pl.pallas_call(
        kernel,
        out_shape=jax.ShapeDtypeStruct((num_tiles, 8, 128), jnp.float32),
        grid_spec=pltpu.PrefetchScalarGridSpec(
            num_scalar_prefetch=0,
            grid=(num_tiles,),
            in_specs=[
                pl.BlockSpec((tile_b, D), lambda i: (i, 0)),
                pl.BlockSpec((tile_b, D), lambda i: (i, 0)),
            ],
            out_specs=pl.BlockSpec((1, 8, 128), lambda i: (i, 0, 0)),
        ),
        compiler_params=pltpu.CompilerParams(
            dimension_semantics=("parallel",),   # independent tiles -> megacore OK
            vmem_limit_bytes=32 * 1024 * 1024,
        ),
    )(image_features, combined_features)

    # Each tile wrote its masked partial sum at [t, 0, 0]; everything else is 0.
    return jnp.sum(partials) / jnp.float32(B)


def _reference(image_features, combined_features):
    x = image_features.astype(jnp.float32)
    y = combined_features.astype(jnp.float32)
    dot = jnp.sum(x * y, axis=-1)
    nx = jnp.maximum(jnp.linalg.norm(x, axis=-1), _EPS)
    ny = jnp.maximum(jnp.linalg.norm(y, axis=-1), _EPS)
    return jnp.mean(1.0 - dot / (nx * ny))


if __name__ == "__main__":
    key = jax.random.PRNGKey(0)

    # Main check: (batch_size, feature_dim) = (8, 32), f32.
    B, D = 8, 32
    k1, k2, k3, k4 = jax.random.split(key, 4)
    image_features = jax.random.normal(k1, (B, D), dtype=jnp.float32)
    combined_features = jax.random.normal(k2, (B, D), dtype=jnp.float32)

    loss = cosine_loss(image_features, combined_features, margin=0.1)
    jax.block_until_ready(loss)
    ref = _reference(image_features, combined_features)
    assert jnp.allclose(loss, ref, atol=1e-5, rtol=1e-5), (loss, ref)

    # Tail-masking check: batch not a multiple of the sublane width.
    B2, D2 = 13, 32
    x2 = jax.random.normal(k3, (B2, D2), dtype=jnp.float32)
    y2 = jax.random.normal(k4, (B2, D2), dtype=jnp.float32)
    loss2 = cosine_loss(x2, y2)
    jax.block_until_ready(loss2)
    ref2 = _reference(x2, y2)
    assert jnp.allclose(loss2, ref2, atol=1e-5, rtol=1e-5), (loss2, ref2)

    print("KERNEL_OK")
</pallas_src>

<mosaic_0001>
module attributes {stable_mosaic.version = 11 : i64} {
  func.func @_cosine_loss_kernel(%arg0: i32, %arg1: memref<8x32xf32, #tpu.memory_space<vmem>>, %arg2: memref<8x32xf32, #tpu.memory_space<vmem>>, %arg3: memref<1x8x128xf32, #tpu.memory_space<vmem>>) attributes {dimension_semantics = [#tpu.dimension_semantics<parallel>], iteration_bounds = array<i64: 1>, scalar_prefetch = 0 : i64, scratch_operands = 0 : i64, tpu.core_type = #tpu.core_type<tc>, window_params = [{transform_indices = @transform_0, window_bounds = array<i64: 8, 32>}, {transform_indices = @transform_1, window_bounds = array<i64: 8, 32>}, {transform_indices = @transform_2, window_bounds = array<i64: 1, 8, 128>}]} {
    %c0 = arith.constant 0 : index
    %c0_0 = arith.constant 0 : index
    %0 = vector.load %arg1[%c0, %c0_0] : memref<8x32xf32, #tpu.memory_space<vmem>>, vector<8x32xf32>
    %c0_1 = arith.constant 0 : index
    %c0_2 = arith.constant 0 : index
    %1 = vector.load %arg2[%c0_1, %c0_2] : memref<8x32xf32, #tpu.memory_space<vmem>>, vector<8x32xf32>
    %2 = arith.mulf %0, %1 : vector<8x32xf32>
    %cst = arith.constant dense<0.000000e+00> : vector<8xf32>
    %3 = vector.multi_reduction <add>, %2, %cst [1] : vector<8x32xf32> to vector<8xf32>
    %4 = vector.shape_cast %3 : vector<8xf32> to vector<8x1xf32>
    %5 = arith.mulf %0, %0 : vector<8x32xf32>
    %cst_3 = arith.constant dense<0.000000e+00> : vector<8xf32>
    %6 = vector.multi_reduction <add>, %5, %cst_3 [1] : vector<8x32xf32> to vector<8xf32>
    %7 = vector.shape_cast %6 : vector<8xf32> to vector<8x1xf32>
    %8 = arith.mulf %1, %1 : vector<8x32xf32>
    %cst_4 = arith.constant dense<0.000000e+00> : vector<8xf32>
    %9 = vector.multi_reduction <add>, %8, %cst_4 [1] : vector<8x32xf32> to vector<8xf32>
    %10 = vector.shape_cast %9 : vector<8xf32> to vector<8x1xf32>
    %cst_5 = arith.constant 1.000000e-16 : f32
    %11 = vector.broadcast %cst_5 : f32 to vector<8x1xf32>
    %12 = arith.maximumf %7, %11 : vector<8x1xf32>
    %cst_6 = arith.constant 1.000000e-16 : f32
    %13 = vector.broadcast %cst_6 : f32 to vector<8x1xf32>
    %14 = arith.maximumf %10, %13 : vector<8x1xf32>
    %15 = arith.mulf %12, %14 : vector<8x1xf32>
    %16 = math.rsqrt %15 : vector<8x1xf32>
    %17 = arith.mulf %4, %16 : vector<8x1xf32>
    %18 = tpu.iota {dimensions = array<i32: 0>} : vector<8x1xi32>
    %c8_i32 = arith.constant 8 : i32
    %19 = arith.muli %arg0, %c8_i32 : i32
    %20 = vector.broadcast %19 : i32 to vector<8x1xi32>
    %21 = arith.addi %18, %20 : vector<8x1xi32>
    %c8_i32_7 = arith.constant 8 : i32
    %22 = vector.broadcast %c8_i32_7 : i32 to vector<8x1xi32>
    %23 = arith.cmpi slt, %21, %22 : vector<8x1xi32>
    %cst_8 = arith.constant 1.000000e+00 : f32
    %24 = vector.broadcast %cst_8 : f32 to vector<8x1xf32>
    %25 = arith.subf %24, %17 : vector<8x1xf32>
    %cst_9 = arith.constant 0.000000e+00 : f32
    %26 = vector.broadcast %cst_9 : f32 to vector<8x1xf32>
    %27 = arith.select %23, %25, %26 : vector<8x1xi1>, vector<8x1xf32>
    %28 = vector.shape_cast %27 : vector<8x1xf32> to vector<1x8x1xf32>
    %cst_10 = arith.constant dense<0.000000e+00> : vector<1xf32>
    %29 = vector.multi_reduction <add>, %28, %cst_10 [1, 2] : vector<1x8x1xf32> to vector<1xf32>
    %30 = vector.shape_cast %29 : vector<1xf32> to vector<1x1x1xf32>
    %31 = vector.extract %30[0, 0, 0] : f32 from vector<1x1x1xf32>
    %32 = tpu.iota {dimensions = array<i32: 0>} : vector<8x128xi32>
    %33 = tpu.iota {dimensions = array<i32: 1>} : vector<8x128xi32>
    %c0_i32 = arith.constant 0 : i32
    %34 = vector.broadcast %c0_i32 : i32 to vector<8x128xi32>
    %35 = arith.cmpi eq, %32, %34 : vector<8x128xi32>
    %c0_i32_11 = arith.constant 0 : i32
    %36 = vector.broadcast %c0_i32_11 : i32 to vector<8x128xi32>
    %37 = arith.cmpi eq, %33, %36 : vector<8x128xi32>
    %38 = arith.andi %35, %37 : vector<8x128xi1>
    %cst_12 = arith.constant 0.000000e+00 : f32
    %39 = vector.broadcast %31 : f32 to vector<8x128xf32>
    %40 = vector.broadcast %cst_12 : f32 to vector<8x128xf32>
    %41 = arith.select %38, %39, %40 : vector<8x128xi1>, vector<8x128xf32>
    %c0_13 = arith.constant 0 : index
    %c0_14 = arith.constant 0 : index
    %c0_15 = arith.constant 0 : index
    %42 = vector.load %arg3[%c0_13, %c0_14, %c0_15] : memref<1x8x128xf32, #tpu.memory_space<vmem>>, vector<1x8x128xf32>
    %43 = vector.shape_cast %42 : vector<1x8x128xf32> to vector<8x128xf32>
    %44 = vector.shape_cast %41 : vector<8x128xf32> to vector<1x8x128xf32>
    tpu.vector_store %arg3[%c0_13, %c0_14, %c0_15], %44 {strides = array<i32>} : memref<1x8x128xf32, #tpu.memory_space<vmem>>, vector<1x8x128xf32>,
    return
  }
  func.func @transform_0(%arg0: i32) -> (i32, i32) {
    %c0_i32 = arith.constant 0 : i32
    %c0_i32_0 = arith.constant 0 : i32
    return %arg0, %c0_i32 : i32, i32
  }
  func.func @transform_1(%arg0: i32) -> (i32, i32) {
    %c0_i32 = arith.constant 0 : i32
    %c0_i32_0 = arith.constant 0 : i32
    return %arg0, %c0_i32 : i32, i32
  }
  func.func @transform_2(%arg0: i32) -> (i32, i32, i32) {
    %c0_i32 = arith.constant 0 : i32
    %c0_i32_0 = arith.constant 0 : i32
    %c0_i32_1 = arith.constant 0 : i32
    return %arg0, %c0_i32, %c0_i32_0 : i32, i32, i32
  }
}

</mosaic_0001>

<bundles_post_ra>
// kernel: tpu_custom_call.1
= control target key start
LH: loop header
LB: loop body
LE: loop exit
PB: predicated region body
PF: predicated region fallthrough
CT: control target
= control target key end

     0   :  { %7 = vsyncpa [#allocation3], 0  ;;  %s232_s0 = inlined_call_operand.hbm [shape: f32[8,32], index: 0, kind: input, shape index: {}]   ;;  %s233_s1 = inlined_call_operand.hbm [shape: f32[8,32], index: 1, kind: input, shape index: {}]   ;;  %s234_s2 = inlined_call_operand.hbm [shape: f32[1,8,128], index: 2, kind: output, shape index: {}]  }
   0x1   :  { %8 = vsyncpa [#allocation6], 0 }
   0x2   :  { %9 = vsyncpa [#allocation4], 0  ;;  %s178_s9 = smov [#allocation2]   ;;  %s179_s11 = smov [#allocation5]  }
   0x3   :  { %s16_s10 = sshll.u32 %s178_s9, 4  ;;  %s26_s12 = sshll.u32 %s179_s11, 4  ;;  %s17_s10 = int_to_ptr.vmem [resolvable:$true] %s16_s10  ;;  %s27_s12 = int_to_ptr.vmem [resolvable:$true] %s26_s12 }
   0x4   :  { %s106_s15 = scalar_lea.hbm %s232_s0, 128 }
   0x5   :  { %p107_p0 = scmp.ne.s32.totalorder %s232_s0, %s106_s15  ;;  %p110_p1 = scmp.lt.u32.totalorder %s106_s15, %s232_s0 }
   0x7   :  { %p112_p2 = pnand %p110_p1, %p107_p0 }
   0x9   :  { %115 = shalt.err (!%p112_p2)
}
   0xa   :  { %s116_s20 = scalar_lea.vmem %s17_s10, 128  ;;  %p121_p4 = scmp.lt.s32.totalorder %s17_s10, %s17_s10 }
   0xb   :  { %p117_p3 = scmp.ne.s32.totalorder %s17_s10, %s116_s20  ;;  %p122_p5 = scmp.lt.s32.totalorder %s116_s20, %s116_s20 }
   0xd   :  { %p123_p6 = por %p122_p5, %p121_p4 }
   0xf   :  { %p124_p7 = pnand %p123_p6, %p117_p3 }
  0x11   :  { %127 = shalt.err (!%p124_p7)
}
  0x12   :  { %19 = dma.hbm_to_vmem [thread:$0]  %s232_s0, 128, %s17_s10, [#allocation3]  }
  0x13   :  { %s128_s25 = scalar_lea.hbm %s233_s1, 128 }
  0x14   :  { %p129_p8 = scmp.ne.s32.totalorder %s233_s1, %s128_s25  ;;  %p132_p9 = scmp.lt.u32.totalorder %s128_s25, %s233_s1 }
  0x16   :  { %p134_p10 = pnand %p132_p9, %p129_p8 }
  0x18   :  { %137 = shalt.err (!%p134_p10)
}
  0x19   :  { %s138_s30 = scalar_lea.vmem %s27_s12, 128  ;;  %p143_p12 = scmp.lt.s32.totalorder %s27_s12, %s27_s12 }
  0x1a   :  { %p139_p11 = scmp.ne.s32.totalorder %s27_s12, %s138_s30  ;;  %p144_p13 = scmp.lt.s32.totalorder %s138_s30, %s138_s30 }
  0x1c   :  { %p145_p0 = por %p144_p13, %p143_p12 }
  0x1e   :  { %p146_p1 = pnand %p145_p0, %p139_p11 }
  0x20   :  { %149 = shalt.err (!%p146_p1)
}
  0x21   :  { %29 = dma.hbm_to_vmem [thread:$0]  %s233_s1, 128, %s27_s12, [#allocation6]  }
  0x22   :  { %172 = dma.done.wait [#allocation3], 128  }
  0x23   :  { %173 = vsyncadd [#allocation3], 4294967168 }
  0x24   :  { %174 = dma.done.wait [#allocation6], 128  }
  0x25   :  { %175 = vsyncadd [#allocation6], 4294967168  ;;  %v36_v0 = vld [vmem:[#allocation2] sm:$0xff]  ;;  %vm39_vm0 = vcmask 261120   ;;  %v37_v1 = vld [vmem:[#allocation5] sm:$0xff]  ;;  %vm64_vm1 = vcmask 7168   ;;  %v56_v25 = vlaneseq }
  0x26   :  { %v43_v2 = vmul.f32 %v36_v0, %v36_v0  ;;  %v47_v3 = vmul.f32 %v37_v1, %v37_v1  ;;  %v38_v4 = vmul.f32 %v37_v1, %v36_v0  ;;  %s180_s1 = smov [#allocation7]  }
  0x27   :  { %v57_v26 = vshrl.u32 %v56_v25, 7  ;;  %v76_v27 = vand.u32 127, %v56_v25  ;;  %s89_s4 = sshll.u32 %s180_s1, 4  ;;  %s90_s4 = int_to_ptr.vmem [resolvable:$true] %s89_s4 }
  0x28   :  { %v44_v5 = vsel %vm39_vm0, %v43_v2, 0.0  ;;  %v40_v6 = vsel %vm39_vm0, %v38_v4, 0.0  ;;  %v48_v7 = vsel %vm39_vm0, %v47_v3, 0.0  ;;  %s150_s6 = scalar_lea.vmem %s90_s4, 128  ;;  %p155_p3 = scmp.lt.s32.totalorder %s90_s4, %s90_s4 }
  0x29   :  { %45 = vadd.xlane.f32.xlu0 %v44_v5  ;;  %41 = vadd.xlane.f32.xlu1 %v40_v6  ;;  %vm77_vm2 = vcmp.eq.s32.totalorder %v57_v26, 0  ;;  %vm78_vm3 = vcmp.eq.s32.totalorder %v76_v27, 0  ;;  %p151_p2 = scmp.ne.s32.totalorder %s90_s4, %s150_s6  ;;  %p156_p4 = scmp.lt.s32.totalorder %s150_s6, %s150_s6 }
  0x2a   :  { %vm79_vm4 = vmand %vm77_vm2, %vm78_vm3 }
  0x2b   :  { %p157_p5 = por %p156_p4, %p155_p3 }
  0x2d   :  { %49 = vadd.xlane.f32.xlu0 %v48_v7  ;;  %p158_p6 = pnand %p157_p5, %p151_p2 }
  0xb6   :  { %v46_v8 = vpop.xlane.xlu0 %45  ;;  %v42_v13 = vpop.xlane.xlu1 %41 }
  0xb7   :  { %v51_v10 = vmax.f32 %v46_v8, 1e-16 }
  0xba   :  { %v50_v9 = vpop.xlane.xlu0 %49 }
  0xbb   :  { %v52_v11 = vmax.f32 %v50_v9, 1e-16 }
  0xbd   :  { %v53_v12 = vmul.f32 %v52_v11, %v51_v10 }
  0xbf   :  { %104 = vrsqrt.f32 %v53_v12 }
  0xc9   :  { %v105_v14 = vpop.eup %104 }
  0xca   :  { %v55_v15 = vmul.f32 %v105_v14, %v42_v13 }
  0xcc   :  { %v62_v16 = vsub.f32 1.0, %v55_v15 }
  0xce   :  { %v65_v17 = vsel %vm64_vm1, %v62_v16, 0.0 }
  0xcf   :  { %66 = vadd.xlane.f32.xlu1 %v65_v17 }
 0x15c   :  { %v67_v18 = vpop.xlane.xlu1 %66 }
 0x15d   :  { %v68_v19 = vrot.slane %v67_v18, 4 }
 0x15f   :  { %v69_v20 = vadd.f32 %v68_v19, %v67_v18 }
 0x161   :  { %v70_v21 = vrot.slane %v69_v20, 2 }
 0x163   :  { %v71_v22 = vadd.f32 %v70_v21, %v69_v20 }
 0x165   :  { %v72_v23 = vrot.slane %v71_v22, 1 }
 0x167   :  { %v73_v24 = vadd.f32 %v72_v23, %v71_v22 }
 0x169   :  { %99 = vpush %v73_v24 }
 0x19a   :  { %s100_s5 = spop %99 }
 0x19b   :  { %v80_v28 = vstv %s100_s5 }
 0x19c   :  { %v81_v29 = vsel %vm79_vm4, %v80_v28, 0.0 }
 0x19d   :  { %82 = vst [vmem:[#allocation7] sm:$0xff] %v81_v29 }
 0x19e   :  { %161 = shalt.err (!%p158_p6)
}
 0x19f   :  { %s162_s9 = scalar_lea.hbm %s234_s2, 128 }
 0x1a0   :  { %p163_p7 = scmp.ne.s32.totalorder %s234_s2, %s162_s9  ;;  %p166_p8 = scmp.lt.u32.totalorder %s162_s9, %s234_s2 }
 0x1a2   :  { %p168_p9 = pnand %p166_p8, %p163_p7 }
 0x1a4   :  { %171 = shalt.err (!%p168_p9)
}
 0x1a5   :  { %92 = dma.vmem_to_hbm [thread:$0]  %s90_s4, 128, %s234_s2, [#allocation4]  }
 0x1a6   :  { %176 = dma.done.wait [#allocation4], 128  }
 0x1a7   :  { %177 = vsyncadd [#allocation4], 4294967168 }
 0x1a8   :  { %96 = vsyncpa [#allocation3], 1 }
 0x1a9   :  { %97 = vsyncpa [#allocation6], 1 }
 0x1aa   :  { %98 = vsyncpa [#allocation4], 1 }

</bundles_post_ra>
